<compile_context>
chip_gen: v7x
topology: tpu7x:2x2x1
jax: 0.10.0
libtpu: 0.0.40
codegen_flags: <defaults>
</compile_context>

<pallas_src>
import functools

import jax
import jax.numpy as jnp
from jax import lax
from jax.experimental import pallas as pl
from jax.experimental.pallas import tpu as pltpu


def mlp_kernel(x_ref,
               w1_ref, b1_ref,
               w2_ref, b2_ref,
               w3_ref, b3_ref,
               w45_ref, b45_ref,
               o_ref,
               *, chunk, num_chunks):
    """Batch-major MLP chain on one (tb, F) tile of the input.

    Weights arrive pre-transposed as (in, out), so every matmul is in the
    standard MXU orientation (contraction = lhs last dim / rhs first dim).
    linear4+linear5 are folded into w45 (exact: no activation between them).
    """

    def layer_chain(xc):
        h = jnp.dot(xc, w1_ref[...], preferred_element_type=jnp.float32)
        h = jnp.maximum(h + b1_ref[...], 0.0)
        h = jnp.dot(h, w2_ref[...], preferred_element_type=jnp.float32)
        h = jnp.maximum(h + b2_ref[...], 0.0)
        h = jnp.dot(h, w3_ref[...], preferred_element_type=jnp.float32)
        h = jnp.maximum(h + b3_ref[...], 0.0)
        h = jnp.dot(h, w45_ref[...], preferred_element_type=jnp.float32)
        return h + b45_ref[...]

    if num_chunks == 1:
        # Small tile: process the whole block at once.
        o_ref[...] = layer_chain(x_ref[...]).astype(o_ref.dtype)
    else:
        # Large tile: sub-chunk loop keeps live activations bounded.
        def body(j, carry):
            start = pl.multiple_of(j * chunk, chunk)
            xc = x_ref[pl.ds(start, chunk), :]
            o_ref[pl.ds(start, chunk), :] = layer_chain(xc).astype(o_ref.dtype)
            return carry

        lax.fori_loop(0, num_chunks, body, 0)


def mlp_forward(x, params, *, block_batch=8192, chunk=512):
    """x: (B, input_dim). params: list of (W(out,in), b(out,)) in PyTorch
    nn.Linear layout. Returns (B, output_dim) float32."""
    B, F = x.shape
    (w1, b1), (w2, b2), (w3, b3), (w4, b4), (w5, b5) = params
    out_dim = w5.shape[0]

    # --- fold linear4 and linear5 (exact algebra, no activation between) -----
    w45 = w5 @ w4                       # (out_dim, 32)
    b45 = w5 @ b4 + b5                  # (out_dim,)

    # Weights pre-transposed to (in, out); tiny and VMEM-resident.
    # No cast of x in the wrapper (kernel computes in x.dtype, accumulates f32).
    ws = [jnp.asarray(w.T, dtype=x.dtype) for w in (w1, w2, w3, w45)]
    bs = [jnp.asarray(b, jnp.float32).reshape(1, -1) for b in (b1, b2, b3, b45)]

    # --- batch tiling: large blocks, no input padding, ragged last block -----
    assert block_batch % chunk == 0
    if B <= chunk:
        tb, num_chunks = B, 1                       # single full-extent block
    else:
        tb = min(block_batch, (B // chunk) * chunk)  # multiple of chunk, <= B
        num_chunks = tb // chunk
    grid = pl.cdiv(B, tb)                           # ragged last block is OK

    flat_args = [x]
    in_specs = [pl.BlockSpec((tb, F), lambda i: (i, 0))]
    for w, b in zip(ws, bs):
        flat_args += [w, b]
        in_specs += [pl.BlockSpec(w.shape, lambda i: (0, 0)),
                     pl.BlockSpec(b.shape, lambda i: (0, 0))]

    out_spec = pl.BlockSpec((tb, out_dim), lambda i: (i, 0))

    # Advisory cost estimate: one pass over x + tiny output / weights.
    flops = 2 * B * (F * 64 + 64 * 32 + 32 * 32 + 32 * out_dim)
    bytes_accessed = (B * F * x.dtype.itemsize + B * out_dim * 4
                      + sum(int(w.size) * w.dtype.itemsize for w in ws)
                      + sum(int(b.size) * 4 for b in bs))
    cost = pl.CostEstimate(flops=flops, transcendentals=0,
                           bytes_accessed=bytes_accessed)

    # VMEM budget: x/out blocks are lane-padded to 128 lanes in VMEM and
    # double-buffered; add slack for weights + spills. Clamp below v7x's 64 MiB.
    lane = lambda n: pl.cdiv(n, 128) * 128
    rows = lambda n: pl.cdiv(n, 8) * 8
    x_buf = rows(tb) * lane(F) * x.dtype.itemsize
    o_buf = rows(tb) * lane(out_dim) * 4
    vmem_limit = int(min(max(2 * (x_buf + o_buf) + (4 << 20), 32 << 20),
                         56 << 20))

    out = pl.pallas_call(
        functools.partial(mlp_kernel, chunk=chunk, num_chunks=num_chunks),
        out_shape=jax.ShapeDtypeStruct((B, out_dim), jnp.float32),
        grid=(grid,),
        in_specs=in_specs,
        out_specs=out_spec,
        compiler_params=pltpu.CompilerParams(
            dimension_semantics=("parallel",),
            vmem_limit_bytes=vmem_limit),
        cost_estimate=cost,
    )(*flat_args)

    return out


def init_params(key, input_dim, output_dim):
    """Deterministic init mirroring nn.Linear: W (out,in), b (out,),
    both U(-1/sqrt(in), 1/sqrt(in))."""
    dims = [(input_dim, 64), (64, 32), (32, 32), (32, 16), (16, output_dim)]
    params = []
    for i, (din, dout) in enumerate(dims):
        kw, kb = jax.random.split(jax.random.fold_in(key, i))
        bound = 1.0 / jnp.sqrt(jnp.float32(din))
        w = jax.random.uniform(kw, (dout, din), jnp.float32, -bound, bound)
        b = jax.random.uniform(kb, (dout,), jnp.float32, -bound, bound)
        params.append((w, b))
    return params


def reference_forward(x, params):
    h = x
    for i, (w, b) in enumerate(params):
        h = h @ w.T + b
        if i < 3:  # ReLU only after linear1..linear3
            h = jnp.maximum(h, 0.0)
    return h


if __name__ == "__main__":
    key = jax.random.PRNGKey(0)
    input_dim = 10    # kaggle bank-churn has ~10 feature columns
    output_dim = 1

    kx, kp, kx2 = jax.random.split(key, 3)
    params = init_params(kp, input_dim, output_dim)

    # Small case (single block, single chunk).
    batch = 8
    x = jax.random.normal(kx, (batch, input_dim), jnp.float32)
    out = jax.block_until_ready(mlp_forward(x, params))
    ref = reference_forward(x, params)
    assert out.shape == (batch, output_dim)
    assert jnp.allclose(out, ref, atol=1e-4, rtol=1e-4)

    # Larger case exercising multi-block grid + in-kernel chunk loop + ragged
    # last block (no batch padding anywhere).
    batch2 = 1300
    x2 = jax.random.normal(kx2, (batch2, input_dim), jnp.float32)
    out2 = jax.block_until_ready(mlp_forward(x2, params, block_batch=1024))
    ref2 = reference_forward(x2, params)
    assert out2.shape == (batch2, output_dim)
    assert jnp.allclose(out2, ref2, atol=1e-4, rtol=1e-4)

    print("KERNEL_OK")
</pallas_src>

<mosaic_0001>
module attributes {stable_mosaic.version = 11 : i64} {
  func.func @mlp_kernel(%arg0: i32, %arg1: memref<8x10xf32, #tpu.memory_space<vmem>>, %arg2: memref<10x64xf32, #tpu.memory_space<vmem>>, %arg3: memref<1x64xf32, #tpu.memory_space<vmem>>, %arg4: memref<64x32xf32, #tpu.memory_space<vmem>>, %arg5: memref<1x32xf32, #tpu.memory_space<vmem>>, %arg6: memref<32x32xf32, #tpu.memory_space<vmem>>, %arg7: memref<1x32xf32, #tpu.memory_space<vmem>>, %arg8: memref<32x1xf32, #tpu.memory_space<vmem>>, %arg9: memref<1x1xf32, #tpu.memory_space<vmem>>, %arg10: memref<8x1xf32, #tpu.memory_space<vmem>>) attributes {dimension_semantics = [#tpu.dimension_semantics<parallel>], iteration_bounds = array<i64: 1>, scalar_prefetch = 0 : i64, scratch_operands = 0 : i64, tpu.core_type = #tpu.core_type<tc>, window_params = [{transform_indices = @transform_0, window_bounds = array<i64: 8, 10>}, {pipeline_mode = #tpu.pipeline_mode<synchronous>, transform_indices = @transform_1, window_bounds = array<i64: 10, 64>}, {pipeline_mode = #tpu.pipeline_mode<synchronous>, transform_indices = @transform_2, window_bounds = array<i64: 1, 64>}, {pipeline_mode = #tpu.pipeline_mode<synchronous>, transform_indices = @transform_3, window_bounds = array<i64: 64, 32>}, {pipeline_mode = #tpu.pipeline_mode<synchronous>, transform_indices = @transform_4, window_bounds = array<i64: 1, 32>}, {pipeline_mode = #tpu.pipeline_mode<synchronous>, transform_indices = @transform_5, window_bounds = array<i64: 32, 32>}, {pipeline_mode = #tpu.pipeline_mode<synchronous>, transform_indices = @transform_6, window_bounds = array<i64: 1, 32>}, {pipeline_mode = #tpu.pipeline_mode<synchronous>, transform_indices = @transform_7, window_bounds = array<i64: 32, 1>}, {pipeline_mode = #tpu.pipeline_mode<synchronous>, transform_indices = @transform_8, window_bounds = array<i64: 1, 1>}, {transform_indices = @transform_9, window_bounds = array<i64: 8, 1>}]} {
    %c0 = arith.constant 0 : index
    %c0_0 = arith.constant 0 : index
    %0 = vector.load %arg1[%c0, %c0_0] : memref<8x10xf32, #tpu.memory_space<vmem>>, vector<8x10xf32>
    %c0_1 = arith.constant 0 : index
    %c0_2 = arith.constant 0 : index
    %1 = vector.load %arg2[%c0_1, %c0_2] : memref<10x64xf32, #tpu.memory_space<vmem>>, vector<10x64xf32>
    %cst = arith.constant dense<0.000000e+00> : vector<8x64xf32>
    %2 = tpu.matmul %0, %1, %cst {dimension_numbers = #tpu.dot_dimension_numbers<[1], [0], [0], [1], [0, 0, 1, 1], [], []>} : vector<8x10xf32>, vector<10x64xf32>, vector<8x64xf32> -> vector<8x64xf32>
    %c0_3 = arith.constant 0 : index
    %c0_4 = arith.constant 0 : index
    %3 = vector.load %arg3[%c0_3, %c0_4] : memref<1x64xf32, #tpu.memory_space<vmem>>, vector<1x64xf32>
    %4 = vector.broadcast %3 : vector<1x64xf32> to vector<8x64xf32>
    %5 = arith.addf %2, %4 : vector<8x64xf32>
    %cst_5 = arith.constant 0.000000e+00 : f32
    %6 = vector.broadcast %cst_5 : f32 to vector<8x64xf32>
    %7 = arith.maximumf %5, %6 : vector<8x64xf32>
    %c0_6 = arith.constant 0 : index
    %c0_7 = arith.constant 0 : index
    %8 = vector.load %arg4[%c0_6, %c0_7] : memref<64x32xf32, #tpu.memory_space<vmem>>, vector<64x32xf32>
    %cst_8 = arith.constant dense<0.000000e+00> : vector<8x32xf32>
    %9 = tpu.matmul %7, %8, %cst_8 {dimension_numbers = #tpu.dot_dimension_numbers<[1], [0], [0], [1], [0, 0, 1, 1], [], []>} : vector<8x64xf32>, vector<64x32xf32>, vector<8x32xf32> -> vector<8x32xf32>
    %c0_9 = arith.constant 0 : index
    %c0_10 = arith.constant 0 : index
    %10 = vector.load %arg5[%c0_9, %c0_10] : memref<1x32xf32, #tpu.memory_space<vmem>>, vector<1x32xf32>
    %11 = vector.broadcast %10 : vector<1x32xf32> to vector<8x32xf32>
    %12 = arith.addf %9, %11 : vector<8x32xf32>
    %cst_11 = arith.constant 0.000000e+00 : f32
    %13 = vector.broadcast %cst_11 : f32 to vector<8x32xf32>
    %14 = arith.maximumf %12, %13 : vector<8x32xf32>
    %c0_12 = arith.constant 0 : index
    %c0_13 = arith.constant 0 : index
    %15 = vector.load %arg6[%c0_12, %c0_13] : memref<32x32xf32, #tpu.memory_space<vmem>>, vector<32x32xf32>
    %cst_14 = arith.constant dense<0.000000e+00> : vector<8x32xf32>
    %16 = tpu.matmul %14, %15, %cst_14 {dimension_numbers = #tpu.dot_dimension_numbers<[1], [0], [0], [1], [0, 0, 1, 1], [], []>} : vector<8x32xf32>, vector<32x32xf32>, vector<8x32xf32> -> vector<8x32xf32>
    %c0_15 = arith.constant 0 : index
    %c0_16 = arith.constant 0 : index
    %17 = vector.load %arg7[%c0_15, %c0_16] : memref<1x32xf32, #tpu.memory_space<vmem>>, vector<1x32xf32>
    %18 = vector.broadcast %17 : vector<1x32xf32> to vector<8x32xf32>
    %19 = arith.addf %16, %18 : vector<8x32xf32>
    %cst_17 = arith.constant 0.000000e+00 : f32
    %20 = vector.broadcast %cst_17 : f32 to vector<8x32xf32>
    %21 = arith.maximumf %19, %20 : vector<8x32xf32>
    %c0_18 = arith.constant 0 : index
    %c0_19 = arith.constant 0 : index
    %22 = vector.load %arg8[%c0_18, %c0_19] : memref<32x1xf32, #tpu.memory_space<vmem>>, vector<32x1xf32>
    %cst_20 = arith.constant dense<0.000000e+00> : vector<8x1xf32>
    %23 = tpu.matmul %21, %22, %cst_20 {dimension_numbers = #tpu.dot_dimension_numbers<[1], [0], [0], [1], [0, 0, 1, 1], [], []>} : vector<8x32xf32>, vector<32x1xf32>, vector<8x1xf32> -> vector<8x1xf32>
    %c0_21 = arith.constant 0 : index
    %c0_22 = arith.constant 0 : index
    %24 = vector.load %arg9[%c0_21, %c0_22] : memref<1x1xf32, #tpu.memory_space<vmem>>, vector<1x1xf32>
    %25 = vector.broadcast %24 : vector<1x1xf32> to vector<8x1xf32>
    %26 = arith.addf %23, %25 : vector<8x1xf32>
    %c0_23 = arith.constant 0 : index
    %c0_24 = arith.constant 0 : index
    %27 = vector.load %arg10[%c0_23, %c0_24] : memref<8x1xf32, #tpu.memory_space<vmem>>, vector<8x1xf32>
    tpu.vector_store %arg10[%c0_23, %c0_24], %26 {strides = array<i32>} : memref<8x1xf32, #tpu.memory_space<vmem>>, vector<8x1xf32>,
    return
  }
  func.func @transform_0(%arg0: i32) -> (i32, i32) {
    %c0_i32 = arith.constant 0 : i32
    %c0_i32_0 = arith.constant 0 : i32
    return %arg0, %c0_i32 : i32, i32
  }
  func.func @transform_1(%arg0: i32) -> (i32, i32) {
    %c0_i32 = arith.constant 0 : i32
    %c0_i32_0 = arith.constant 0 : i32
    %c0_i32_1 = arith.constant 0 : i32
    return %c0_i32, %c0_i32_0 : i32, i32
  }
  func.func @transform_2(%arg0: i32) -> (i32, i32) {
    %c0_i32 = arith.constant 0 : i32
    %c0_i32_0 = arith.constant 0 : i32
    %c0_i32_1 = arith.constant 0 : i32
    return %c0_i32, %c0_i32_0 : i32, i32
  }
  func.func @transform_3(%arg0: i32) -> (i32, i32) {
    %c0_i32 = arith.constant 0 : i32
    %c0_i32_0 = arith.constant 0 : i32
    %c0_i32_1 = arith.constant 0 : i32
    return %c0_i32, %c0_i32_0 : i32, i32
  }
  func.func @transform_4(%arg0: i32) -> (i32, i32) {
    %c0_i32 = arith.constant 0 : i32
    %c0_i32_0 = arith.constant 0 : i32
    %c0_i32_1 = arith.constant 0 : i32
    return %c0_i32, %c0_i32_0 : i32, i32
  }
  func.func @transform_5(%arg0: i32) -> (i32, i32) {
    %c0_i32 = arith.constant 0 : i32
    %c0_i32_0 = arith.constant 0 : i32
    %c0_i32_1 = arith.constant 0 : i32
    return %c0_i32, %c0_i32_0 : i32, i32
  }
  func.func @transform_6(%arg0: i32) -> (i32, i32) {
    %c0_i32 = arith.constant 0 : i32
    %c0_i32_0 = arith.constant 0 : i32
    %c0_i32_1 = arith.constant 0 : i32
    return %c0_i32, %c0_i32_0 : i32, i32
  }
  func.func @transform_7(%arg0: i32) -> (i32, i32) {
    %c0_i32 = arith.constant 0 : i32
    %c0_i32_0 = arith.constant 0 : i32
    %c0_i32_1 = arith.constant 0 : i32
    return %c0_i32, %c0_i32_0 : i32, i32
  }
  func.func @transform_8(%arg0: i32) -> (i32, i32) {
    %c0_i32 = arith.constant 0 : i32
    %c0_i32_0 = arith.constant 0 : i32
    %c0_i32_1 = arith.constant 0 : i32
    return %c0_i32, %c0_i32_0 : i32, i32
  }
  func.func @transform_9(%arg0: i32) -> (i32, i32) {
    %c0_i32 = arith.constant 0 : i32
    %c0_i32_0 = arith.constant 0 : i32
    return %arg0, %c0_i32 : i32, i32
  }
}

</mosaic_0001>

<bundles_post_ra>
// kernel: tpu_custom_call.1
= control target key start
LH: loop header
LB: loop body
LE: loop exit
PB: predicated region body
PF: predicated region fallthrough
CT: control target
= control target key end

     0   :  { %vm48_vm0 = vcmask 1041408   ;;  %v500_v0 = vmov 0.0|0.0   ;;  %vm501_vm1 = vmmov 1   ;;  %vm502_vm3 = vmmov 0   ;;  %s641_s1 = inlined_call_operand.vmem [shape: f32[10,64], index: 1, kind: input, shape index: {}]   ;;  %s642_s3 = inlined_call_operand.vmem [shape: f32[64,32], index: 3, kind: input, shape index: {}]   ;;  %s643_s0 = inlined_call_operand.vmem [shape: f32[8,10], index: 0, kind: input, shape index: {}]   ;;  %s644_s5 = inlined_call_operand.vmem [shape: f32[32,32], index: 5, kind: input, shape index: {}]   ;;  %s645_s2 = inlined_call_operand.vmem [shape: f32[1,64], index: 2, kind: input, shape index: {}]   ;;  %s646_s4 = inlined_call_operand.vmem [shape: f32[1,32], index: 4, kind: input, shape index: {}]   ;;  %s647_s7 = inlined_call_operand.vmem [shape: f32[32,1], index: 7, kind: input, shape index: {}]   ;;  %s648_s8 = inlined_call_operand.<no memory space> [shape: f32[1,1], index: 8, kind: input, shape index: {}]   ;;  %s649_s6 = inlined_call_operand.vmem [shape: f32[1,32], index: 6, kind: input, shape index: {}]   ;;  %s650_s9 = inlined_call_operand.vmem [shape: f32[8,1], index: 9, kind: output, shape index: {}]  }
   0x1   :  { %468 = vmatprep.subr.bf16.mxu0 %v500_v0  ;;  %v35_v1 = vld [vmem:[%s641_s1] sm:$0xff]  ;;  %v36_v2 = vld [vmem:[%s641_s1 + $0x8] sm:$0x3]  ;;  %vm470_vm2 = vmpackc.low %vm48_vm0, %vm501_vm1  ;;  %472 = vmatprep.subr.bf16.mxu1 %v500_v0  ;;  %v503_v4 = vmov 0.0   ;;  %vm44_vm4 = vcmask 80896   ;;  %vm138_vm5 = vcmask 523264   ;;  %v14_v40 = vstv %s648_s8 }
   0x2   :  { %v469_v3 = vpack.c.bf16 %v36_v2, %v35_v1  ;;  %424 = vmatprep.mubr.msk.f32.mxu0 %vm502_vm3, %v503_v4  ;;  %v123_v5 = vld [vmem:[%s642_s3] sm:$0xff]  ;;  %v124_v6 = vld [vmem:[%s642_s3 + $0x8] sm:$0xff]  ;;  %443 = vmatprep.mubr.msk.f32.mxu1 %vm502_vm3, %v503_v4  ;;  %v125_v8 = vld [vmem:[%s642_s3 + $0x10] sm:$0xff]  ;;  %vm224_vm6 = vcmask 261120   ;;  %15 = vst [vmem:[#allocation2] sm:$0x1] %v14_v40 }
   0x3   :  { %v473_v7 = vpack.c.bf16 %v124_v6, %v123_v5  ;;  %v126_v9 = vld [vmem:[%s642_s3 + $0x18] sm:$0xff]  ;;  %v34_v10 = vld [vmem:[%s643_s0] sm:$0xff]  ;;  %v128_v13 = vld [vmem:[%s642_s3 + $0x28] sm:$0xff]  ;;  %vm383_vm7 = vcmask 7168  }
   0x4   :  { %471 = vmatpush3.bf16.msk.msra.mxu0 %vm470_vm2, %v469_v3  ;;  %v476_v11 = vpack.c.bf16 %v126_v9, %v125_v8  ;;  %v127_v12 = vld [vmem:[%s642_s3 + $0x20] sm:$0xff]  ;;  %v129_v15 = vld [vmem:[%s642_s3 + $0x30] sm:$0xff]  ;;  %v130_v16 = vld [vmem:[%s642_s3 + $0x38] sm:$0xff] }
   0x5   :  { %474 = vmatpush3.bf16.msra.mxu1 %v473_v7  ;;  %484 = vmatprep.subr.bf16.mxu0 %v500_v0  ;;  %v479_v14 = vpack.c.bf16 %v128_v13, %v127_v12  ;;  %v482_v17 = vpack.c.bf16 %v130_v16, %v129_v15  ;;  %v213_v18 = vld [vmem:[%s644_s5] sm:$0xff]  ;;  %v214_v19 = vld [vmem:[%s644_s5 + $0x8] sm:$0xff]  ;;  %v215_v26 = vld [vmem:[%s644_s5 + $0x10] sm:$0xff] }
   0x6   :  { %475 = vmatprep.subr.bf16.mxu1 %v500_v0  ;;  %v485_v20 = vpack.c.bf16 %v214_v19, %v213_v18  ;;  %v389_v21 = vld [vmem:[%s645_s2] ss:$0 sm:$0xff]  ;;  %v216_v27 = vld [vmem:[%s644_s5 + $0x18] sm:$0xff]  ;;  %v300_v31 = vld [vmem:[%s647_s7 + $0x8] sm:$0xff] }
   0x7   :  { %425 = vmatmul.mubr.msk.f32.vlgmr.msra.gmra.mrb[0].mxu0 %vm44_vm4, %v34_v10  ;;  %v488_v28 = vpack.c.bf16 %v216_v27, %v215_v26  ;;  %v392_v29 = vld [vmem:[%s646_s4] ss:$0 sm:$0xff]  ;;  %v301_v37 = vld [vmem:[%s647_s7 + $0x10] sm:$0xff]  ;;  %v302_v38 = vld [vmem:[%s647_s7 + $0x18] sm:$0xff] }
   0x8   :  { %454 = vmatprep.mubr.msk.f32.mxu0 %vm502_vm3, %v503_v4  ;;  %486 = vmatpush3.bf16.msra.mxu0 %v485_v20  ;;  %v299_v30 = vld [vmem:[%s647_s7] sm:$0xff]  ;;  %v494_v39 = vpack.c.bf16 %v302_v38, %v301_v37 }
   0x9   :  { %477 = vmatpush3.bf16.msra.mxu1 %v476_v11  ;;  %487 = vmatprep.subr.bf16.mxu0 %v500_v0  ;;  %v491_v35 = vpack.c.bf16 %v300_v31, %v299_v30  ;;  %v394_v41 = vld [vmem:[%s649_s6] ss:$0 sm:$0xff] }
   0xa   :  { %478 = vmatprep.subr.bf16.mxu1 %v500_v0  ;;  %v396_v46 = vld [vmem:[#allocation2] ss:$0 sm:$0xff] }
   0xc   :  { %489 = vmatpush3.bf16.msra.mxu0 %v488_v28 }
   0xd   :  { %480 = vmatpush3.bf16.msra.mxu1 %v479_v14  ;;  %490 = vmatprep.subr.bf16.mxu0 %v500_v0 }
   0xe   :  { %481 = vmatprep.subr.bf16.mxu1 %v500_v0 }
  0x11   :  { %483 = vmatpush3.bf16.msra.mxu1 %v482_v17 }
  0xda   :  { %v118_v22 = vpop.f32.mrb[0].mxu0 }
  0xdb   :  { %v119_v23 = vadd.f32 %v389_v21, %v118_v22  ;;  %v426_v24 = vpop.f32.mrb[1].mxu0 }
  0xdd   :  { %v122_v25 = vmax.f32 %v119_v23, 0.0 }
  0xdf   :  { %444 = vmatmul.mubr.msk.f32.vlgmr.msra.gmra.mrb[0].mxu1 %vm138_vm5, %v122_v25 }
 0x1b2   :  { %v208_v32 = vpop.f32.mrb[0].mxu1 }
 0x1b3   :  { %v209_v33 = vadd.f32 %v392_v29, %v208_v32  ;;  %v445_v34 = vpop.f32.mrb[1].mxu1 }
 0x1b5   :  { %v212_v36 = vmax.f32 %v209_v33, 0.0 }
 0x1b7   :  { %455 = vmatmul.mubr.msk.f32.vlgmr.msra.gmra.mrb[2].mxu0 %vm224_vm6, %v212_v36 }
 0x1b8   :  { %492 = vmatpush3.bf16.msra.mxu0 %v491_v35  ;;  %465 = vmatprep.mubr.msk.f32.mxu0 %vm502_vm3, %v503_v4 }
 0x1b9   :  { %493 = vmatprep.subr.bf16.mxu0 %v500_v0 }
 0x1bc   :  { %495 = vmatpush3.bf16.msra.mxu0 %v494_v39 }
 0x28a   :  { %v294_v42 = vpop.f32.mrb[2].mxu0 }
 0x28b   :  { %v295_v43 = vadd.f32 %v394_v41, %v294_v42  ;;  %v456_v44 = vpop.f32.mrb[3].mxu0 }
 0x28d   :  { %v298_v45 = vmax.f32 %v295_v43, 0.0 }
 0x28f   :  { %466 = vmatmul.mubr.msk.f32.vlgmr.msra.gmra.mrb[4].mxu0 %vm224_vm6, %v298_v45 }
 0x362   :  { %v379_v47 = vpop.f32.mrb[4].mxu0 }
 0x363   :  { %v380_v48 = vadd.f32 %v396_v46, %v379_v47  ;;  %v467_v49 = vpop.f32.mrb[5].mxu0 }
 0x365   :  { %384 = vst.msk [vmem:[%s650_s9] sm:$0xff] %vm383_vm7, %v380_v48 }

</bundles_post_ra>
